<compile_context>
chip_gen: v6e
topology: v6e:2x2x1
jax: 0.10.0
libtpu: 0.0.40
codegen_flags: <defaults>
</compile_context>

<pallas_src>
import functools

import jax
import jax.numpy as jnp
from jax import lax
from jax.experimental import pallas as pl
from jax.experimental.pallas import tpu as pltpu


def _cdiv(a: int, b: int) -> int:
    return -(-a // b)


def _layernorm_kernel(x_ref, w_ref, b_ref, o_ref, *, eps: float, inv_h: float):
    # Pass 1: mean.  The f32 upcast feeds the reduction and is not kept live.
    xs = x_ref[...].astype(jnp.float32)                       # (TR, H)
    mean = jnp.sum(xs, axis=-1, keepdims=True) * inv_h        # (TR, 1)
    # Pass 2: re-read + re-upcast x (vld slots have huge slack in a DMA-bound
    # kernel) so only one (TR, H) f32 temporary is live at a time.  Two-pass
    # (x - mean) variance matches F.layer_norm numerics (no cancellation).
    d = x_ref[...].astype(jnp.float32) - mean                 # (TR, H)
    var = jnp.sum(d * d, axis=-1, keepdims=True) * inv_h      # biased variance
    inv = lax.rsqrt(var + eps)
    # elementwise affine (f32 weight/bias broadcast over rows), cast back.
    o_ref[...] = (d * inv * w_ref[...] + b_ref[...]).astype(o_ref.dtype)


def _vmem_capacity_bytes() -> int:
    try:
        info = pltpu.get_tpu_info()
        cap = getattr(info, "vmem_capacity_bytes", None)
        if cap:
            return int(cap)
    except Exception:
        pass
    return 64 * 1024 * 1024  # conservative default (v7x per-TC)


def _choose_row_tile(R: int, H: int, itemsize: int) -> int:
    """Row tile: generation-aware block target, sublane aligned, with enough
    grid steps for pipelining / v7x megacore balance."""
    sublane = max(8, 32 // itemsize)          # 16 for bf16/f16, 8 for f32
    row_bytes = max(1, H * itemsize)

    small_vmem = _vmem_capacity_bytes() <= 96 * 1024 * 1024   # v7x (64 MiB/TC) or unknown
    if small_vmem:
        x_block_target = 2 * 1024 * 1024
        f32_cap = 4 * 1024 * 1024
        row_cap = 4096
        target_steps = 8                      # >= ~4 steps per TensorCore
    else:                                      # v5e / v6e: 128 MiB VMEM
        x_block_target = 4 * 1024 * 1024
        f32_cap = 8 * 1024 * 1024
        row_cap = 8192
        target_steps = 4                      # single TC: just pipeline depth

    tr = x_block_target // row_bytes
    tr = min(tr, f32_cap // max(1, H * 4))    # cap the live f32 (tr, H) temporary
    tr = min(tr, row_cap)
    tr = max(sublane, (tr // sublane) * sublane)

    if tr >= R:
        return R                              # single full-extent block (always legal)

    # Prefer >= target_steps grid steps, but never shrink blocks below ~512 KiB
    # (keeps the ~0.35 us per-grid-step overhead hidden under DMA time).
    min_rows = max(sublane, ((512 * 1024) // row_bytes // sublane) * sublane)
    if _cdiv(R, tr) < target_steps:
        tr_steps = _cdiv(_cdiv(R, target_steps), sublane) * sublane
        tr = min(tr, max(min_rows, tr_steps))

    # v7x megacore: prefer an even step count so the two TensorCores balance
    # (3 steps = 2-vs-1 split ~= 33% loss).
    if small_vmem:
        steps = _cdiv(R, tr)
        if steps > 1 and steps % 2 == 1:
            t = tr - sublane
            while t >= sublane:
                if _cdiv(R, t) % 2 == 0:
                    tr = t
                    break
                t -= sublane

    return max(sublane, tr)


def layer_norm_f16_support(x, weight=None, bias=None, *, eps: float = 1e-5,
                           normalized_shape=None, row_tile=None):
    """LayerNorm over the trailing normalized dims, computed in f32, output in x.dtype."""
    orig_shape = x.shape
    orig_dtype = x.dtype

    if normalized_shape is None:
        normalized_shape = (orig_shape[-1],)
    elif isinstance(normalized_shape, int):
        normalized_shape = (normalized_shape,)
    n_norm = len(normalized_shape)
    assert tuple(orig_shape[-n_norm:]) == tuple(normalized_shape), \
        "normalized_shape must match trailing dims of x"
    H = 1
    for d in normalized_shape:
        H *= int(d)

    # elementwise_affine=False -> identity affine (matches nn.LayerNorm defaults).
    if weight is None:
        weight = jnp.ones((H,), dtype=jnp.float32)
    if bias is None:
        bias = jnp.zeros((H,), dtype=jnp.float32)

    x2 = x.reshape(-1, H)                                     # [R, H]
    R = x2.shape[0]
    w2 = weight.astype(jnp.float32).reshape(1, H)
    b2 = bias.astype(jnp.float32).reshape(1, H)

    itemsize = jnp.dtype(orig_dtype).itemsize
    tr = int(row_tile) if row_tile is not None else _choose_row_tile(R, H, itemsize)
    tr = max(1, min(tr, R))

    grid = (pl.cdiv(R, tr),)                                  # ragged R: partial last block
    # (row-local math, so garbage OOB rows in the last tile never contaminate
    #  valid rows; OOB stores are masked by Pallas -> no wrapper pad/slice.)

    # VMEM budget from the actual tile: 2x double-buffered input + 2x output
    # blocks, ~3 (tr, H) f32 temporaries in the body, params, ~2 MiB headroom.
    x_block = tr * H * itemsize
    f32_block = tr * H * 4
    vmem_bytes = 4 * x_block + 3 * f32_block + 4 * 4 * H + (2 << 20)
    vmem_limit = max(8 * 1024 * 1024, min(int(vmem_bytes * 5 // 4), 100 * 1024 * 1024))

    cost = pl.CostEstimate(
        flops=8 * R * H,
        transcendentals=R,                                    # rsqrt per row
        bytes_accessed=2 * R * H * itemsize + 2 * H * 4,
    )

    # TODO(synk): if H < 128 (lane-sparse), fold rows into the lane dim in the
    # wrapper to keep stores lane-dense; CLIP hidden sizes (512/768/1024) are fine.
    out = pl.pallas_call(
        functools.partial(_layernorm_kernel, eps=float(eps), inv_h=1.0 / H),
        out_shape=jax.ShapeDtypeStruct((R, H), orig_dtype),
        grid_spec=pltpu.PrefetchScalarGridSpec(
            num_scalar_prefetch=0,
            grid=grid,
            in_specs=[
                pl.BlockSpec((tr, H), lambda i: (i, 0)),      # x row tile
                pl.BlockSpec((1, H), lambda i: (0, 0)),       # weight (broadcast)
                pl.BlockSpec((1, H), lambda i: (0, 0)),       # bias   (broadcast)
            ],
            out_specs=pl.BlockSpec((tr, H), lambda i: (i, 0)),
        ),
        compiler_params=pltpu.CompilerParams(
            dimension_semantics=("parallel",),
            vmem_limit_bytes=vmem_limit,
        ),
        cost_estimate=cost,
    )(x2, w2, b2)

    return out.reshape(orig_shape)


def _ref_layer_norm(x, w, b, eps):
    xf = x.astype(jnp.float32)
    mean = jnp.mean(xf, axis=-1, keepdims=True)
    var = jnp.mean((xf - mean) ** 2, axis=-1, keepdims=True)
    return ((xf - mean) * lax.rsqrt(var + eps) * w + b).astype(x.dtype)


if __name__ == "__main__":
    # Small shape consistent with the module's forward: [..., H], H normalized.
    B, S, H = 2, 16, 128
    key = jax.random.PRNGKey(0)
    # half-precision input (bf16 is TPU's native half type; semantics identical:
    # compute in f32, cast result back to the input dtype)
    x = jax.random.normal(key, (B, S, H), dtype=jnp.float32).astype(jnp.bfloat16)

    # Matches nn.LayerNorm.reset_parameters: weight = ones, bias = zeros.
    weight = jnp.ones((H,), dtype=jnp.float32)
    bias = jnp.zeros((H,), dtype=jnp.float32)

    y = layer_norm_f16_support(x, weight, bias, eps=1e-5)
    y = jax.block_until_ready(y)

    ref = _ref_layer_norm(x, weight, bias, 1e-5)
    assert y.dtype == x.dtype
    assert y.shape == x.shape
    assert jnp.allclose(y.astype(jnp.float32), ref.astype(jnp.float32),
                        atol=1e-2, rtol=1e-2)

    # Ragged-R path: R not divisible by the row tile -> exercises the masked
    # partial last block (no wrapper-side pad/slice); non-trivial affine params.
    R2, H2 = 1000, 128
    x2 = jax.random.normal(jax.random.PRNGKey(0), (R2, H2),
                           dtype=jnp.float32).astype(jnp.bfloat16)
    w2 = (1.0 + 0.1 * jax.random.normal(jax.random.PRNGKey(1), (H2,))).astype(jnp.float32)
    b2 = (0.1 * jax.random.normal(jax.random.PRNGKey(2), (H2,))).astype(jnp.float32)
    y2 = jax.block_until_ready(
        layer_norm_f16_support(x2, w2, b2, eps=1e-5, row_tile=128))
    ref2 = _ref_layer_norm(x2, w2, b2, 1e-5)
    assert jnp.allclose(y2.astype(jnp.float32), ref2.astype(jnp.float32),
                        atol=1e-2, rtol=1e-2)

    print("KERNEL_OK")
</pallas_src>

<mosaic_0001>
module attributes {stable_mosaic.version = 11 : i64} {
  func.func @_layernorm_kernel(%arg0: i32, %arg1: memref<32x128xbf16, #tpu.memory_space<vmem>>, %arg2: memref<1x128xf32, #tpu.memory_space<vmem>>, %arg3: memref<1x128xf32, #tpu.memory_space<vmem>>, %arg4: memref<32x128xbf16, #tpu.memory_space<vmem>>) attributes {dimension_semantics = [#tpu.dimension_semantics<parallel>], iteration_bounds = array<i64: 1>, scalar_prefetch = 0 : i64, scratch_operands = 0 : i64, tpu.core_type = #tpu.core_type<tc>, window_params = [{transform_indices = @transform_0, window_bounds = array<i64: 32, 128>}, {pipeline_mode = #tpu.pipeline_mode<synchronous>, transform_indices = @transform_1, window_bounds = array<i64: 1, 128>}, {pipeline_mode = #tpu.pipeline_mode<synchronous>, transform_indices = @transform_2, window_bounds = array<i64: 1, 128>}, {transform_indices = @transform_3, window_bounds = array<i64: 32, 128>}]} {
    %c0 = arith.constant 0 : index
    %c0_0 = arith.constant 0 : index
    %0 = vector.load %arg1[%c0, %c0_0] : memref<32x128xbf16, #tpu.memory_space<vmem>>, vector<32x128xbf16>
    %1 = arith.extf %0 : vector<32x128xbf16> to vector<32x128xf32>
    %cst = arith.constant dense<0.000000e+00> : vector<32xf32>
    %2 = vector.multi_reduction <add>, %1, %cst [1] : vector<32x128xf32> to vector<32xf32>
    %3 = vector.shape_cast %2 : vector<32xf32> to vector<32x1xf32>
    %cst_1 = arith.constant 7.812500e-03 : f32
    %4 = vector.broadcast %cst_1 : f32 to vector<32x1xf32>
    %5 = arith.mulf %3, %4 : vector<32x1xf32>
    %c0_2 = arith.constant 0 : index
    %c0_3 = arith.constant 0 : index
    %6 = vector.load %arg1[%c0_2, %c0_3] : memref<32x128xbf16, #tpu.memory_space<vmem>>, vector<32x128xbf16>
    %7 = arith.extf %6 : vector<32x128xbf16> to vector<32x128xf32>
    %8 = vector.broadcast %5 : vector<32x1xf32> to vector<32x128xf32>
    %9 = arith.subf %7, %8 : vector<32x128xf32>
    %10 = arith.mulf %9, %9 : vector<32x128xf32>
    %cst_4 = arith.constant dense<0.000000e+00> : vector<32xf32>
    %11 = vector.multi_reduction <add>, %10, %cst_4 [1] : vector<32x128xf32> to vector<32xf32>
    %12 = vector.shape_cast %11 : vector<32xf32> to vector<32x1xf32>
    %cst_5 = arith.constant 7.812500e-03 : f32
    %13 = vector.broadcast %cst_5 : f32 to vector<32x1xf32>
    %14 = arith.mulf %12, %13 : vector<32x1xf32>
    %cst_6 = arith.constant 9.99999974E-6 : f32
    %15 = vector.broadcast %cst_6 : f32 to vector<32x1xf32>
    %16 = arith.addf %14, %15 : vector<32x1xf32>
    %17 = math.rsqrt %16 : vector<32x1xf32>
    %18 = vector.broadcast %17 : vector<32x1xf32> to vector<32x128xf32>
    %19 = arith.mulf %9, %18 : vector<32x128xf32>
    %c0_7 = arith.constant 0 : index
    %c0_8 = arith.constant 0 : index
    %20 = vector.load %arg2[%c0_7, %c0_8] : memref<1x128xf32, #tpu.memory_space<vmem>>, vector<1x128xf32>
    %21 = vector.broadcast %20 : vector<1x128xf32> to vector<32x128xf32>
    %22 = arith.mulf %19, %21 : vector<32x128xf32>
    %c0_9 = arith.constant 0 : index
    %c0_10 = arith.constant 0 : index
    %23 = vector.load %arg3[%c0_9, %c0_10] : memref<1x128xf32, #tpu.memory_space<vmem>>, vector<1x128xf32>
    %24 = vector.broadcast %23 : vector<1x128xf32> to vector<32x128xf32>
    %25 = arith.addf %22, %24 : vector<32x128xf32>
    %26 = arith.truncf %25 : vector<32x128xf32> to vector<32x128xbf16>
    %c0_11 = arith.constant 0 : index
    %c0_12 = arith.constant 0 : index
    %27 = vector.load %arg4[%c0_11, %c0_12] : memref<32x128xbf16, #tpu.memory_space<vmem>>, vector<32x128xbf16>
    tpu.vector_store %arg4[%c0_11, %c0_12], %26 {strides = array<i32>} : memref<32x128xbf16, #tpu.memory_space<vmem>>, vector<32x128xbf16>,
    return
  }
  func.func @transform_0(%arg0: i32) -> (i32, i32) {
    %c0_i32 = arith.constant 0 : i32
    %c0_i32_0 = arith.constant 0 : i32
    return %arg0, %c0_i32 : i32, i32
  }
  func.func @transform_1(%arg0: i32) -> (i32, i32) {
    %c0_i32 = arith.constant 0 : i32
    %c0_i32_0 = arith.constant 0 : i32
    %c0_i32_1 = arith.constant 0 : i32
    return %c0_i32, %c0_i32_0 : i32, i32
  }
  func.func @transform_2(%arg0: i32) -> (i32, i32) {
    %c0_i32 = arith.constant 0 : i32
    %c0_i32_0 = arith.constant 0 : i32
    %c0_i32_1 = arith.constant 0 : i32
    return %c0_i32, %c0_i32_0 : i32, i32
  }
  func.func @transform_3(%arg0: i32) -> (i32, i32) {
    %c0_i32 = arith.constant 0 : i32
    %c0_i32_0 = arith.constant 0 : i32
    return %arg0, %c0_i32 : i32, i32
  }
}

</mosaic_0001>

<bundles_post_ra>
// kernel: tpu_custom_call.1
= control target key start
LH: loop header
LB: loop body
LE: loop exit
PB: predicated region body
PF: predicated region fallthrough
CT: control target
= control target key end

     0   :  { %8 = vsyncpa [#allocation3], 0  ;;  %s268_s0 = inlined_call_operand.hbm [shape: bf16[32,128], index: 0, kind: input, shape index: {}]   ;;  %s269_s1 = inlined_call_operand.vmem [shape: f32[1,128], index: 1, kind: input, shape index: {}]   ;;  %s270_s2 = inlined_call_operand.vmem [shape: f32[1,128], index: 2, kind: input, shape index: {}]   ;;  %s271_s3 = inlined_call_operand.hbm [shape: bf16[32,128], index: 3, kind: output, shape index: {}]  }
   0x1   :  { %9 = vsyncpa [#allocation4], 0  ;;  %s226_s12 = smov [#allocation2]  }
   0x2   :  { %s15_s13 = sshll.u32 %s226_s12, 4  ;;  %s16_s13 = int_to_ptr.vmem [resolvable:$true] %s15_s13 }
   0x3   :  { %s190_s14 = scalar_lea.vmem %s16_s13, 256  ;;  %p195_p1 = scmp.lt.s32.totalorder %s16_s13, %s16_s13 }
   0x4   :  { %p191_p0 = scmp.ne.s32.totalorder %s16_s13, %s190_s14  ;;  %p196_p2 = scmp.lt.s32.totalorder %s190_s14, %s190_s14 }
   0x6   :  { %p197_p3 = por %p196_p2, %p195_p1 }
   0x8   :  { %p198_p4 = pnand %p197_p3, %p191_p0 }
   0xa   :  { %201 = shalt.err (!%p198_p4)
}
   0xb   :  { %s227_s15 = smov 64   ;;  %s228_s16 = smov 4  }
   0xc   :  { %21 = dma.hbm_to_vmem [thread:$0]  %s268_s0, 256, %s16_s13, [#allocation3], %s227_s15, %s227_s15, %s228_s16  }
   0xd   :  { %222 = dma.done.wait [#allocation3], 256  }
   0xe   :  { %223 = vsyncadd [#allocation3], 4294967040  ;;  %v151_v0 = vld [vmem:[#allocation2] sm:$0xff]   ;;  %v168_v1 = vld [vmem:[#allocation2 + $0x8] sm:$0xff]   ;;  %s229_s22 = smov [#allocation5]  }
   0xf   :  { %v152_v2 = vunpack.c.l.bf16 %v151_v0  ;;  %v156_v3 = vunpack.c.l.bf16 %v168_v1  ;;  %v153_v4 = vunpack.c.h.bf16 %v151_v0  ;;  %v157_v5 = vunpack.c.h.bf16 %v168_v1  ;;  %v140_v36 = vld [vmem:[%s269_s1] ss:$0 sm:$0xff]  ;;  %s128_s23 = sshll.u32 %s229_s22, 4  ;;  %s129_s23 = int_to_ptr.vmem [resolvable:$true] %s128_s23 }
  0x10   :  { %v141_v42 = vld [vmem:[%s270_s2] ss:$0 sm:$0xff]  ;;  %s202_s1 = scalar_lea.vmem %s129_s23, 256  ;;  %p207_p6 = scmp.lt.s32.totalorder %s129_s23, %s129_s23 }
  0x11   :  { %37 = vadd.xlane.f32.xlu0 %v152_v2  ;;  %41 = vadd.xlane.f32.xlu1 %v156_v3  ;;  %p203_p5 = scmp.ne.s32.totalorder %s129_s23, %s202_s1  ;;  %p208_p7 = scmp.lt.s32.totalorder %s202_s1, %s202_s1 }
  0x13   :  { %p209_p8 = por %p208_p7, %p207_p6 }
  0x15   :  { %39 = vadd.xlane.f32.xlu0 %v153_v4  ;;  %43 = vadd.xlane.f32.xlu1 %v157_v5  ;;  %p210_p9 = pnand %p209_p8, %p203_p5 }
  0x9a   :  { %v38_v6 = vpop.xlane.xlu0 %37  ;;  %v42_v7 = vpop.xlane.xlu1 %41 }
  0x9b   :  { %v45_v8 = vmul.f32 0.0078125, %v38_v6  ;;  %v47_v9 = vmul.f32 0.0078125, %v42_v7 }
  0x9d   :  { %v49_v10 = vsub.f32 %v152_v2, %v45_v8  ;;  %v51_v11 = vsub.f32 %v156_v3, %v47_v9 }
  0x9e   :  { %v40_v12 = vpop.xlane.xlu0 %39  ;;  %v44_v13 = vpop.xlane.xlu1 %43 }
  0x9f   :  { %v46_v14 = vmul.f32 0.0078125, %v40_v12  ;;  %v53_v15 = vmul.f32 %v49_v10, %v49_v10  ;;  %v48_v16 = vmul.f32 0.0078125, %v44_v13  ;;  %v55_v19 = vmul.f32 %v51_v11, %v51_v11 }
  0xa1   :  { %v50_v17 = vsub.f32 %v153_v4, %v46_v14  ;;  %57 = vadd.xlane.f32.xlu0 %v53_v15  ;;  %v52_v18 = vsub.f32 %v157_v5, %v48_v16 }
  0xa3   :  { %v54_v20 = vmul.f32 %v50_v17, %v50_v17  ;;  %v56_v21 = vmul.f32 %v52_v18, %v52_v18 }
  0xa5   :  { %61 = vadd.xlane.f32.xlu0 %v55_v19  ;;  %59 = vadd.xlane.f32.xlu1 %v54_v20 }
  0xa9   :  { %63 = vadd.xlane.f32.xlu1 %v56_v21 }
 0x12a   :  { %v58_v22 = vpop.xlane.xlu0 %57 }
 0x12b   :  { %v65_v23 = vmul.f32 0.0078125, %v58_v22 }
 0x12d   :  { %v69_v24 = vadd.f32 1e-05, %v65_v23 }
 0x12e   :  { %v60_v25 = vpop.xlane.xlu1 %59  ;;  %v62_v26 = vpop.xlane.xlu0 %61 }
 0x12f   :  { %174 = vrsqrt.f32 %v69_v24  ;;  %v66_v27 = vmul.f32 0.0078125, %v60_v25  ;;  %v67_v28 = vmul.f32 0.0078125, %v62_v26 }
 0x131   :  { %v70_v29 = vadd.f32 1e-05, %v66_v27  ;;  %v71_v30 = vadd.f32 1e-05, %v67_v28 }
 0x132   :  { %v64_v31 = vpop.xlane.xlu1 %63 }
 0x133   :  { %176 = vrsqrt.f32 %v70_v29  ;;  %v68_v32 = vmul.f32 0.0078125, %v64_v31 }
 0x134   :  { %178 = vrsqrt.f32 %v71_v30 }
 0x135   :  { %v72_v33 = vadd.f32 1e-05, %v68_v32 }
 0x137   :  { %180 = vrsqrt.f32 %v72_v33 }
 0x13c   :  { %v175_v34 = vpop.eup %174 }
 0x13d   :  { %v77_v35 = vmul.f32 %v175_v34, %v49_v10 }
 0x13f   :  { %v88_v40 = vmul.f32 %v140_v36, %v77_v35 }
 0x140   :  { %v177_v37 = vpop.eup %176 }
 0x141   :  { %v179_v38 = vpop.eup %178  ;;  %v78_v39 = vmul.f32 %v177_v37, %v50_v17  ;;  %v99_v47 = vadd.f32 %v141_v42, %v88_v40 }
 0x142   :  { %v79_v41 = vmul.f32 %v179_v38, %v51_v11 }
 0x143   :  { %v89_v43 = vmul.f32 %v140_v36, %v78_v39 }
 0x144   :  { %v181_v44 = vpop.eup %180  ;;  %v90_v46 = vmul.f32 %v140_v36, %v79_v41 }
 0x145   :  { %v80_v45 = vmul.f32 %v181_v44, %v52_v18  ;;  %v100_v48 = vadd.f32 %v141_v42, %v89_v43 }
 0x146   :  { %v101_v51 = vadd.f32 %v141_v42, %v90_v46 }
 0x147   :  { %v91_v49 = vmul.f32 %v140_v36, %v80_v45  ;;  %v161_v50 = vpack.c.bf16 %v100_v48, %v99_v47 }
 0x149   :  { %v102_v52 = vadd.f32 %v141_v42, %v91_v49  ;;  %162 = vst [vmem:[#allocation5] sm:$0xff] %v161_v50  }
 0x14b   :  { %v166_v53 = vpack.c.bf16 %v102_v52, %v101_v51 }
 0x14d   :  { %169 = vst [vmem:[#allocation5 + $0x8] sm:$0xff] %v166_v53  }
 0x14e   :  { %213 = shalt.err (!%p210_p9)
}
 0x14f   :  { %134 = dma.vmem_to_hbm [thread:$0]  %s129_s23, 256, %s271_s3, [#allocation4], %s227_s15, %s227_s15, %s228_s16  }
 0x150   :  { %224 = dma.done.wait [#allocation4], 256  }
 0x151   :  { %225 = vsyncadd [#allocation4], 4294967040 }
 0x152   :  { %138 = vsyncpa [#allocation3], 1 }
 0x153   :  { %139 = vsyncpa [#allocation4], 1 }

</bundles_post_ra>
